<compile_context>
chip_gen: v6e
topology: v6e:2x2x1
jax: 0.10.0
libtpu: 0.0.40
codegen_flags: <defaults>
</compile_context>

<pallas_src>
import jax
import jax.numpy as jnp
from jax.experimental import pallas as pl
from jax.experimental.pallas import tpu as pltpu

_LANES = 128
_MAX_COLS = 8192                           # lane-dense slab width cap
_DEFAULT_TARGET_BLOCK_BYTES = 4 * 1024 * 1024   # v5e / v6e
_V7X_TARGET_BLOCK_BYTES = 8 * 1024 * 1024       # v7x (higher HBM BW, fewer steps)
_MIN_PALLAS_BYTES = 256 * 1024             # below this, plain fused jnp is better


def _affine_kernel(x_ref, o_ref):
    # ((x + 2) * 3 - 1) / 4  ==  x * 0.75 + 1.25   (0.75 / 1.25 exact in f32/bf16)
    o_ref[...] = (x_ref[...] * 0.75 + 1.25).astype(o_ref.dtype)


def _affine_ref(x):
    # Plain fused expression (used for tiny inputs, tails, non-float dtypes).
    return ((x + 2.0) * 3.0 - 1.0) / 4.0


def _target_block_bytes():
    """~8 MiB blocks on v7x (VMEM <= 64 MiB), ~4 MiB on v5e/v6e."""
    try:
        info = pltpu.get_tpu_info()
        vmem = getattr(info, "vmem_capacity_bytes", None)
        if vmem is not None and vmem <= (64 << 20):
            return _V7X_TARGET_BLOCK_BYTES
    except Exception:
        pass
    return _DEFAULT_TARGET_BLOCK_BYTES


def _sublane_multiple(dtype):
    """Packed sublane count: 8 for 4-byte, 16 for 2-byte, 32 for 1-byte dtypes."""
    itemsize = jnp.dtype(dtype).itemsize
    return max(8, 32 // max(1, itemsize))


def _choose_cols(n_elems, lanes=_LANES, max_cols=_MAX_COLS):
    """Largest multiple of `lanes` that divides n_elems, capped at max_cols."""
    best = lanes
    c = lanes
    upper = min(max_cols, n_elems)
    while c <= upper:
        if n_elems % c == 0:
            best = c
        c += lanes
    return best


def _pallas_affine_1d(flat):
    """Run the affine kernel on a 1-D array whose length is a multiple of 128."""
    dtype = flat.dtype
    n = flat.shape[0]
    itemsize = jnp.dtype(dtype).itemsize

    # Lane-dense slab: wide last dim (multiple of 128), rows = remainder.
    cols = _choose_cols(n)
    rows = n // cols
    slab = flat.reshape(rows, cols)

    sublane = _sublane_multiple(dtype)
    target_block_bytes = _target_block_bytes()
    target_rows = max(sublane, (target_block_bytes // itemsize) // cols)
    slab_bytes = n * itemsize

    if rows <= target_rows:
        if slab_bytes > (1 << 20) and rows >= 2 * sublane:
            # Keep >= 2 grid steps so a parallel axis can shard across both
            # TensorCores on v7x instead of pinning everything to one core.
            half = pl.cdiv(rows, 2)
            block_rows = pl.cdiv(half, sublane) * sublane
        else:
            block_rows = rows                       # whole slab in one block
    else:
        block_rows = max(sublane, (target_rows // sublane) * sublane)

    grid = (pl.cdiv(rows, block_rows),)

    # Scoped-VMEM limit from actual pipeline need: in+out, double-buffered,
    # plus compiler-scratch margin. Clamped so v5e's 16 MiB default is lifted
    # while leaving headroom on v7x's 64 MiB physical VMEM.
    block_bytes = block_rows * cols * itemsize
    vmem_limit = max(16 << 20, min(4 * block_bytes + (8 << 20), 56 << 20))

    cost = pl.CostEstimate(
        flops=2 * n, transcendentals=0, bytes_accessed=2 * n * itemsize
    )

    out = pl.pallas_call(
        _affine_kernel,
        out_shape=jax.ShapeDtypeStruct((rows, cols), dtype),
        grid=grid,
        in_specs=[pl.BlockSpec((block_rows, cols), lambda i: (i, 0))],
        out_specs=pl.BlockSpec((block_rows, cols), lambda i: (i, 0)),
        compiler_params=pltpu.CompilerParams(
            dimension_semantics=("parallel",),
            vmem_limit_bytes=vmem_limit,
        ),
        cost_estimate=cost,
    )(slab)

    return out.reshape(-1)


def pt_module_forward(x, *, min_pallas_bytes=_MIN_PALLAS_BYTES):
    """Apply ((x+2)*3-1)/4 elementwise; Pallas kernel for large float tensors."""
    dtype = x.dtype

    # Integer dtypes: PyTorch true-division promotes to float; let the fused
    # jnp expression handle that promotion exactly (rare path).
    if not jnp.issubdtype(dtype, jnp.floating):
        return _affine_ref(x)

    n = x.size
    itemsize = jnp.dtype(dtype).itemsize
    n_aligned = (n // _LANES) * _LANES

    # Tiny tensors: pallas_call launch/DMA-setup overhead dwarfs the op.
    if n * itemsize < min_pallas_bytes or n_aligned == 0:
        return _affine_ref(x)

    flat = x.reshape(-1)
    if n_aligned != n:
        # Aligned prefix through the kernel; <128-element tail as a tiny jnp op.
        head = _pallas_affine_1d(flat[:n_aligned])
        tail = _affine_ref(flat[n_aligned:])
        return jnp.concatenate([head, tail]).reshape(x.shape)

    return _pallas_affine_1d(flat).reshape(x.shape)


if __name__ == "__main__":
    key = jax.random.PRNGKey(0)
    x = jax.random.normal(key, (2, 4, 16, 16), dtype=jnp.float32)

    # Force the Pallas path for the small example input (the default wrapper
    # would route an 8 KiB tensor to the fused XLA expression).
    y = pt_module_forward(x, min_pallas_bytes=0)
    y = jax.block_until_ready(y)

    y_ref = ((x + 2.0) * 3.0 - 1.0) / 4.0
    assert y.shape == x.shape and y.dtype == x.dtype
    assert jnp.allclose(y, y_ref, atol=1e-5, rtol=1e-6)

    # Default (auto-gated) path on a modest slab that exercises a >=2-step grid.
    x2 = jax.random.normal(jax.random.PRNGKey(1), (8, 8, 64, 128), dtype=jnp.float32)
    y2 = jax.block_until_ready(pt_module_forward(x2))
    assert jnp.allclose(y2, ((x2 + 2.0) * 3.0 - 1.0) / 4.0, atol=1e-5, rtol=1e-6)

    # Unaligned length: 128-aligned prefix via the kernel, tail via jnp.
    x3 = jax.random.normal(jax.random.PRNGKey(2), (130,), dtype=jnp.float32)
    y3 = jax.block_until_ready(pt_module_forward(x3, min_pallas_bytes=0))
    assert jnp.allclose(y3, ((x3 + 2.0) * 3.0 - 1.0) / 4.0, atol=1e-5, rtol=1e-6)

    print("KERNEL_OK")
</pallas_src>

<mosaic_0001>
module attributes {stable_mosaic.version = 11 : i64} {
  func.func @_affine_kernel(%arg0: i32, %arg1: memref<1x2048xf32, #tpu.memory_space<vmem>>, %arg2: memref<1x2048xf32, #tpu.memory_space<vmem>>) attributes {dimension_semantics = [#tpu.dimension_semantics<parallel>], iteration_bounds = array<i64: 1>, scalar_prefetch = 0 : i64, scratch_operands = 0 : i64, tpu.core_type = #tpu.core_type<tc>, window_params = [{transform_indices = @transform_0, window_bounds = array<i64: 1, 2048>}, {transform_indices = @transform_1, window_bounds = array<i64: 1, 2048>}]} {
    %c0 = arith.constant 0 : index
    %c0_0 = arith.constant 0 : index
    %0 = vector.load %arg1[%c0, %c0_0] : memref<1x2048xf32, #tpu.memory_space<vmem>>, vector<1x2048xf32>
    %cst = arith.constant 7.500000e-01 : f32
    %1 = vector.broadcast %cst : f32 to vector<1x2048xf32>
    %2 = arith.mulf %0, %1 : vector<1x2048xf32>
    %cst_1 = arith.constant 1.250000e+00 : f32
    %3 = vector.broadcast %cst_1 : f32 to vector<1x2048xf32>
    %4 = arith.addf %2, %3 : vector<1x2048xf32>
    %c0_2 = arith.constant 0 : index
    %c0_3 = arith.constant 0 : index
    %5 = vector.load %arg2[%c0_2, %c0_3] : memref<1x2048xf32, #tpu.memory_space<vmem>>, vector<1x2048xf32>
    tpu.vector_store %arg2[%c0_2, %c0_3], %4 {strides = array<i32>} : memref<1x2048xf32, #tpu.memory_space<vmem>>, vector<1x2048xf32>,
    return
  }
  func.func @transform_0(%arg0: i32) -> (i32, i32) {
    %c0_i32 = arith.constant 0 : i32
    %c0_i32_0 = arith.constant 0 : i32
    return %arg0, %c0_i32 : i32, i32
  }
  func.func @transform_1(%arg0: i32) -> (i32, i32) {
    %c0_i32 = arith.constant 0 : i32
    %c0_i32_0 = arith.constant 0 : i32
    return %arg0, %c0_i32 : i32, i32
  }
}

</mosaic_0001>

<bundles_post_ra>
// kernel: tpu_custom_call.1
= control target key start
LH: loop header
LB: loop body
LE: loop exit
PB: predicated region body
PF: predicated region fallthrough
CT: control target
= control target key end

     0   :  { %6 = vsyncpa [#allocation3], 0  ;;  %s108_s0 = inlined_call_operand.hbm [shape: f32[1,2048], index: 0, kind: input, shape index: {}]   ;;  %s109_s1 = inlined_call_operand.hbm [shape: f32[1,2048], index: 1, kind: output, shape index: {}]  }
   0x1   :  { %7 = vsyncpa [#allocation4], 0  ;;  %s90_s6 = smov [#allocation2]  }
   0x2   :  { %s14_s7 = sshll.u32 %s90_s6, 4  ;;  %s15_s7 = int_to_ptr.vmem [resolvable:$true] %s14_s7 }
   0x3   :  { %s54_s8 = scalar_lea.vmem %s15_s7, 256  ;;  %p59_p1 = scmp.lt.s32.totalorder %s15_s7, %s15_s7 }
   0x4   :  { %p55_p0 = scmp.ne.s32.totalorder %s15_s7, %s54_s8  ;;  %p60_p2 = scmp.lt.s32.totalorder %s54_s8, %s54_s8 }
   0x6   :  { %p61_p3 = por %p60_p2, %p59_p1 }
   0x8   :  { %p62_p4 = pnand %p61_p3, %p55_p0 }
   0xa   :  { %65 = shalt.err (!%p62_p4)
}
   0xb   :  { %17 = dma.hbm_to_vmem [thread:$0]  %s108_s0, 256, %s15_s7, [#allocation3]  }
   0xc   :  { %86 = dma.done.wait [#allocation3], 256  }
   0xd   :  { %87 = vsyncadd [#allocation3], 4294967040  ;;  %v21_v0 = vld [vmem:[#allocation2] sm:$0xff]  ;;  %v22_v1 = vld [vmem:[#allocation2 + $0x8] sm:$0xff]  ;;  %s91_s11 = smov [#allocation5]  }
   0xe   :  { %s35_s12 = sshll.u32 %s91_s11, 4  ;;  %v23_v2 = vmul.f32 0.75, %v21_v0  ;;  %v24_v3 = vmul.f32 0.75, %v22_v1  ;;  %s36_s12 = int_to_ptr.vmem [resolvable:$true] %s35_s12 }
   0xf   :  { %s66_s13 = scalar_lea.vmem %s36_s12, 256  ;;  %p71_p6 = scmp.lt.s32.totalorder %s36_s12, %s36_s12 }
  0x10   :  { %v25_v4 = vadd.f32 1.25, %v23_v2  ;;  %v26_v5 = vadd.f32 1.25, %v24_v3  ;;  %p67_p5 = scmp.ne.s32.totalorder %s36_s12, %s66_s13  ;;  %p72_p7 = scmp.lt.s32.totalorder %s66_s13, %s66_s13 }
  0x12   :  { %27 = vst [vmem:[#allocation5] sm:$0xff] %v25_v4  ;;  %28 = vst [vmem:[#allocation5 + $0x8] sm:$0xff] %v26_v5  ;;  %p73_p8 = por %p72_p7, %p71_p6 }
  0x14   :  { %p74_p9 = pnand %p73_p8, %p67_p5 }
  0x16   :  { %77 = shalt.err (!%p74_p9)
}
  0x17   :  { %38 = dma.vmem_to_hbm [thread:$0]  %s36_s12, 256, %s109_s1, [#allocation4]  }
  0x18   :  { %88 = dma.done.wait [#allocation4], 256  }
  0x19   :  { %89 = vsyncadd [#allocation4], 4294967040 }
  0x1a   :  { %42 = vsyncpa [#allocation3], 1 }
  0x1b   :  { %43 = vsyncpa [#allocation4], 1 }

</bundles_post_ra>
